<compile_context>
chip_gen: v5e
topology: v5e:2x2
jax: 0.10.0
libtpu: 0.0.40
codegen_flags: <defaults>
</compile_context>

<pallas_src>
import jax
import jax.numpy as jnp
from jax.experimental import pallas as pl
from jax.experimental.pallas import tpu as pltpu


def _mlp_kernel(x_ref, w1_ref, b1_ref, w2_ref, b2_ref, o_ref):
    # x_ref : (2, TB)   batch on lanes
    # w1_ref: (7, 2)    fc1.weight (out, in)
    # b1_ref: (7, 1)    fc1.bias as a column
    # w2_ref: (7, 1)    fc2.weight as a column
    # b2_ref: (1, 1)
    # o_ref : (1, TB)
    x0 = x_ref[0:1, :]                       # (1, TB)
    x1 = x_ref[1:2, :]                       # (1, TB)
    w1 = w1_ref[...]                         # (7, 2)

    # fc1 as VPU broadcast-FMAs (K=2 unrolled): h[j, :] = w1[j,0]*x0 + w1[j,1]*x1 + b1[j]
    h = w1[:, 0:1] * x0 + w1[:, 1:2] * x1 + b1_ref[...]      # (7, TB)
    h = jnp.maximum(h, 0.0)                                   # ReLU

    # fc2 as a weighted cross-sublane reduce (K=7): z = sum_j w2[j] * h[j, :] + b2
    z = jnp.sum(h * w2_ref[...], axis=0, keepdims=True) + b2_ref[...]   # (1, TB)

    o_ref[...] = jax.nn.sigmoid(z).astype(o_ref.dtype)        # Sigmoid (EUP)


def _round_up(a, m):
    return (a + m - 1) // m * m


def simple_mlp_forward(x, w1, b1, w2, b2, *, max_tile=2048):
    """Forward pass of SimpleMLP.

    x : (B, 2) f32 (PyTorch layout, row = sample)
    w1: (7, 2) = fc1.weight, b1: (7,) = fc1.bias
    w2: (1, 7) = fc2.weight, b2: (1,) = fc2.bias
    Returns (B, 1).
    """
    B, in_f = x.shape
    hid = w1.shape[0]

    # Lane-dense layout: batch -> lane axis; params as columns for broadcasting.
    xT = x.T                                  # (2, B)
    b1c = b1.reshape(hid, 1)                  # (7, 1)
    w2c = w2.reshape(hid, 1)                  # (7, 1)
    b2c = b2.reshape(1, 1)                    # (1, 1)

    # Batch tile: multiple of 128 (lane width); pad B up so every tile is full.
    TB = min(max_tile, _round_up(B, 128))
    Bp = _round_up(B, TB)
    if Bp != B:
        xT = jnp.pad(xT, ((0, 0), (0, Bp - B)))
    grid = (Bp // TB,)

    out = pl.pallas_call(
        _mlp_kernel,
        out_shape=jax.ShapeDtypeStruct((1, Bp), x.dtype),
        grid_spec=pltpu.PrefetchScalarGridSpec(
            num_scalar_prefetch=0,
            grid=grid,
            in_specs=[
                pl.BlockSpec((in_f, TB), lambda i: (0, i)),   # x tile (streams)
                pl.BlockSpec((hid, in_f), lambda i: (0, 0)),  # w1 (resident)
                pl.BlockSpec((hid, 1), lambda i: (0, 0)),     # b1 (resident)
                pl.BlockSpec((hid, 1), lambda i: (0, 0)),     # w2 (resident)
                pl.BlockSpec((1, 1), lambda i: (0, 0)),       # b2 (resident)
            ],
            out_specs=pl.BlockSpec((1, TB), lambda i: (0, i)),
        ),
        compiler_params=pltpu.CompilerParams(
            # Batch tiles are independent -> parallel (2 TCs on v7x; neutral elsewhere).
            dimension_semantics=("parallel",),
            # Explicit limit, sized for v7x's 64 MiB physical VMEM; per-tile
            # footprint is only ~tens of KiB so this is generous headroom.
            vmem_limit_bytes=32 * 1024 * 1024,
        ),
        cost_estimate=pl.CostEstimate(
            flops=2 * Bp * (in_f * hid + hid),     # both matmuls
            transcendentals=Bp,                    # sigmoid
            bytes_accessed=Bp * (in_f + 1) * 4 + 4 * (hid * in_f + hid + hid + 1),
        ),
    )(xT, w1, b1c, w2c, b2c)

    # Drop padded rows, back to PyTorch (B, 1) layout.
    return out[:, :B].T


def init_params(key):
    """Deterministic init mirroring PyTorch nn.Linear default (U(-1/sqrt(fan_in), ...)).

    Shapes match PyTorch exactly: fc1.weight (7,2), fc1.bias (7,),
    fc2.weight (1,7), fc2.bias (1,).
    """
    k1, k2, k3, k4 = jax.random.split(key, 4)
    lim1 = 1.0 / jnp.sqrt(2.0)
    lim2 = 1.0 / jnp.sqrt(7.0)
    w1 = jax.random.uniform(k1, (7, 2), jnp.float32, -lim1, lim1)
    b1 = jax.random.uniform(k2, (7,), jnp.float32, -lim1, lim1)
    w2 = jax.random.uniform(k3, (1, 7), jnp.float32, -lim2, lim2)
    b2 = jax.random.uniform(k4, (1,), jnp.float32, -lim2, lim2)
    return w1, b1, w2, b2


def _reference(x, w1, b1, w2, b2):
    # Plain-JAX reference in PyTorch convention (also the faster path for tiny B).
    return jax.nn.sigmoid(jnp.maximum(x @ w1.T + b1, 0.0) @ w2.T + b2)


if __name__ == "__main__":
    key = jax.random.PRNGKey(0)
    kx, kp = jax.random.split(key)

    w1, b1, w2, b2 = init_params(kp)

    # Small demo batch (note: for B this tiny the plain-JAX path is faster;
    # the Pallas kernel pays off once HBM streaming of a large batch dominates).
    B = 8
    x = jax.random.normal(kx, (B, 2), jnp.float32)
    out = jax.block_until_ready(simple_mlp_forward(x, w1, b1, w2, b2))
    ref = _reference(x, w1, b1, w2, b2)
    assert out.shape == (B, 1)
    assert jnp.allclose(out, ref, atol=1e-5, rtol=1e-5)

    # Also exercise the multi-tile, pipelined path (grid > 1, ragged batch).
    B2 = 1000
    x2 = jax.random.normal(kx, (B2, 2), jnp.float32)
    out2 = jax.block_until_ready(
        simple_mlp_forward(x2, w1, b1, w2, b2, max_tile=256))
    ref2 = _reference(x2, w1, b1, w2, b2)
    assert out2.shape == (B2, 1)
    assert jnp.allclose(out2, ref2, atol=1e-5, rtol=1e-5)

    print("KERNEL_OK")
</pallas_src>

<mosaic_0001>
module attributes {stable_mosaic.version = 11 : i64} {
  func.func @_mlp_kernel(%arg0: i32, %arg1: memref<2x128xf32, #tpu.memory_space<vmem>>, %arg2: memref<7x2xf32, #tpu.memory_space<vmem>>, %arg3: memref<7x1xf32, #tpu.memory_space<vmem>>, %arg4: memref<7x1xf32, #tpu.memory_space<vmem>>, %arg5: memref<1x1xf32, #tpu.memory_space<vmem>>, %arg6: memref<1x128xf32, #tpu.memory_space<vmem>>) attributes {dimension_semantics = [#tpu.dimension_semantics<parallel>], iteration_bounds = array<i64: 1>, scalar_prefetch = 0 : i64, scratch_operands = 0 : i64, tpu.core_type = #tpu.core_type<tc>, window_params = [{transform_indices = @transform_0, window_bounds = array<i64: 2, 128>}, {pipeline_mode = #tpu.pipeline_mode<synchronous>, transform_indices = @transform_1, window_bounds = array<i64: 7, 2>}, {pipeline_mode = #tpu.pipeline_mode<synchronous>, transform_indices = @transform_2, window_bounds = array<i64: 7, 1>}, {pipeline_mode = #tpu.pipeline_mode<synchronous>, transform_indices = @transform_3, window_bounds = array<i64: 7, 1>}, {pipeline_mode = #tpu.pipeline_mode<synchronous>, transform_indices = @transform_4, window_bounds = array<i64: 1, 1>}, {transform_indices = @transform_5, window_bounds = array<i64: 1, 128>}]} {
    %c0 = arith.constant 0 : index
    %c0_0 = arith.constant 0 : index
    %0 = vector.load %arg1[%c0, %c0_0] : memref<2x128xf32, #tpu.memory_space<vmem>>, vector<1x128xf32>
    %c1 = arith.constant 1 : index
    %c0_1 = arith.constant 0 : index
    %1 = vector.load %arg1[%c1, %c0_1] : memref<2x128xf32, #tpu.memory_space<vmem>>, vector<1x128xf32>
    %c0_2 = arith.constant 0 : index
    %c0_3 = arith.constant 0 : index
    %2 = vector.load %arg2[%c0_2, %c0_3] : memref<7x2xf32, #tpu.memory_space<vmem>>, vector<7x2xf32>
    %3 = vector.extract_strided_slice %2 {offsets = [0, 0], sizes = [7, 1], strides = [1, 1]} : vector<7x2xf32> to vector<7x1xf32>
    %4 = vector.broadcast %3 : vector<7x1xf32> to vector<7x128xf32>
    %5 = vector.broadcast %0 : vector<1x128xf32> to vector<7x128xf32>
    %6 = arith.mulf %4, %5 : vector<7x128xf32>
    %7 = vector.extract_strided_slice %2 {offsets = [0, 1], sizes = [7, 1], strides = [1, 1]} : vector<7x2xf32> to vector<7x1xf32>
    %8 = vector.broadcast %7 : vector<7x1xf32> to vector<7x128xf32>
    %9 = vector.broadcast %1 : vector<1x128xf32> to vector<7x128xf32>
    %10 = arith.mulf %8, %9 : vector<7x128xf32>
    %11 = arith.addf %6, %10 : vector<7x128xf32>
    %c0_4 = arith.constant 0 : index
    %c0_5 = arith.constant 0 : index
    %12 = vector.load %arg3[%c0_4, %c0_5] : memref<7x1xf32, #tpu.memory_space<vmem>>, vector<7x1xf32>
    %13 = vector.broadcast %12 : vector<7x1xf32> to vector<7x128xf32>
    %14 = arith.addf %11, %13 : vector<7x128xf32>
    %cst = arith.constant 0.000000e+00 : f32
    %15 = vector.broadcast %cst : f32 to vector<7x128xf32>
    %16 = arith.maximumf %14, %15 : vector<7x128xf32>
    %c0_6 = arith.constant 0 : index
    %c0_7 = arith.constant 0 : index
    %17 = vector.load %arg4[%c0_6, %c0_7] : memref<7x1xf32, #tpu.memory_space<vmem>>, vector<7x1xf32>
    %18 = vector.broadcast %17 : vector<7x1xf32> to vector<7x128xf32>
    %19 = arith.mulf %16, %18 : vector<7x128xf32>
    %cst_8 = arith.constant dense<0.000000e+00> : vector<128xf32>
    %20 = vector.multi_reduction <add>, %19, %cst_8 [0] : vector<7x128xf32> to vector<128xf32>
    %21 = vector.shape_cast %20 : vector<128xf32> to vector<1x128xf32>
    %c0_9 = arith.constant 0 : index
    %c0_10 = arith.constant 0 : index
    %22 = vector.load %arg5[%c0_9, %c0_10] : memref<1x1xf32, #tpu.memory_space<vmem>>, vector<1x1xf32>
    %23 = vector.broadcast %22 : vector<1x1xf32> to vector<1x128xf32>
    %24 = arith.addf %21, %23 : vector<1x128xf32>
    %25 = arith.negf %24 : vector<1x128xf32>
    %26 = math.exp %25 : vector<1x128xf32>
    %cst_11 = arith.constant 1.000000e+00 : f32
    %27 = vector.broadcast %cst_11 : f32 to vector<1x128xf32>
    %28 = arith.addf %27, %26 : vector<1x128xf32>
    %29 = arith.divf %27, %28 : vector<1x128xf32>
    %c0_12 = arith.constant 0 : index
    %c0_13 = arith.constant 0 : index
    %30 = vector.load %arg6[%c0_12, %c0_13] : memref<1x128xf32, #tpu.memory_space<vmem>>, vector<1x128xf32>
    tpu.vector_store %arg6[%c0_12, %c0_13], %29 {strides = array<i32>} : memref<1x128xf32, #tpu.memory_space<vmem>>, vector<1x128xf32>,
    return
  }
  func.func @transform_0(%arg0: i32) -> (i32, i32) {
    %c0_i32 = arith.constant 0 : i32
    %c0_i32_0 = arith.constant 0 : i32
    return %c0_i32, %arg0 : i32, i32
  }
  func.func @transform_1(%arg0: i32) -> (i32, i32) {
    %c0_i32 = arith.constant 0 : i32
    %c0_i32_0 = arith.constant 0 : i32
    %c0_i32_1 = arith.constant 0 : i32
    return %c0_i32, %c0_i32_0 : i32, i32
  }
  func.func @transform_2(%arg0: i32) -> (i32, i32) {
    %c0_i32 = arith.constant 0 : i32
    %c0_i32_0 = arith.constant 0 : i32
    %c0_i32_1 = arith.constant 0 : i32
    return %c0_i32, %c0_i32_0 : i32, i32
  }
  func.func @transform_3(%arg0: i32) -> (i32, i32) {
    %c0_i32 = arith.constant 0 : i32
    %c0_i32_0 = arith.constant 0 : i32
    %c0_i32_1 = arith.constant 0 : i32
    return %c0_i32, %c0_i32_0 : i32, i32
  }
  func.func @transform_4(%arg0: i32) -> (i32, i32) {
    %c0_i32 = arith.constant 0 : i32
    %c0_i32_0 = arith.constant 0 : i32
    %c0_i32_1 = arith.constant 0 : i32
    return %c0_i32, %c0_i32_0 : i32, i32
  }
  func.func @transform_5(%arg0: i32) -> (i32, i32) {
    %c0_i32 = arith.constant 0 : i32
    %c0_i32_0 = arith.constant 0 : i32
    return %c0_i32, %arg0 : i32, i32
  }
}

</mosaic_0001>

<bundles_post_ra>
// kernel: tpu_custom_call.1
= control target key start
LH: loop header
LB: loop body
LE: loop exit
PB: predicated region body
PF: predicated region fallthrough
CT: control target
= control target key end

     0   :  { %s202_s0 = inlined_call_operand.vmem [shape: f32[2,128], index: 0, kind: input, shape index: {}]   ;;  %s203_s1 = inlined_call_operand.vmem [shape: f32[7,2], index: 1, kind: input, shape index: {}]   ;;  %s204_s2 = inlined_call_operand.vmem [shape: f32[7,1], index: 2, kind: input, shape index: {}]   ;;  %s205_s3 = inlined_call_operand.vmem [shape: f32[7,1], index: 3, kind: input, shape index: {}]   ;;  %s206_s4 = inlined_call_operand.<no memory space> [shape: f32[1,1], index: 4, kind: input, shape index: {}]   ;;  %s207_s5 = inlined_call_operand.hbm [shape: f32[1,128], index: 5, kind: output, shape index: {}]  }
   0x1   :  { %v10_v0 = vstv %s206_s4 }
   0x2   :  { %11 = vst [vmem:[#allocation2] sm:$0x1] %v10_v0 }
   0x3   :  { %v25_v1 = vld [vmem:[%s203_s1] sm:$0x7f]  ;;  %v148_v3 = vmov 0  }
   0x4   :  { %v40_v2 = vld [vmem:[%s204_s2] sm:$0x7f]  ;;  %111 = vset.pattern.permute.xlu0 %v148_v3  ;;  %113 = vset.pattern.permute.xlu1 %v148_v3 }
   0x5   :  { %28 = vperm.xlu0 %111, %v25_v1   ;;  %43 = vperm.xlu1 %113, %v40_v2  }
   0x9   :  { %v63_v4 = vld [vmem:[#allocation2] sm:$0x1] }
   0xa   :  { %12 = vsyncpa [#allocation4], 0  ;;  %114 = vset.pattern.permute.xlu2 %v148_v3  ;;  %v48_v5 = vld [vmem:[%s205_s3] sm:$0x7f]  ;;  %v149_v6 = vmov 1   ;;  %vm55_vm0 = vcmask 1046528  }
   0xb   :  { %66 = vperm.xlu2 %114, %v63_v4   ;;  %v116_v8 = vld [vmem:[%s202_s0] ss:$0 sm:$0xff]  ;;  %v117_v9 = vld [vmem:[%s202_s0 + $0x1] ss:$0 sm:$0xff]  ;;  %s150_s0 = smov [#allocation3]   ;;  %s98_s29 = sshll.u32 %s207_s5, 4  ;;  %s99_s29 = int_to_ptr.hbm [resolvable:$true] %s98_s29 }
   0xc   :  { %s96_s3 = sshll.u32 %s150_s0, 4  ;;  %s97_s3 = int_to_ptr.vmem [resolvable:$true] %s96_s3 }
   0xd   :  { %112 = vset.pattern.permute.xlu0 %v149_v6  ;;  %51 = vperm.xlu1 %113, %v48_v5  }
   0xe   :  { %34 = vperm.xlu0 %112, %v25_v1  }
  0x16   :  { %115 = vset.pattern.permute.xlu0 %v148_v3 }
  0x65   :  { %v67_v23 = vpop.permute.xlu2 %66 }
  0x66   :  { %v69_v26 = vperm.slane %v67_v23, 0 }
  0x77   :  { %v29_v7 = vpop.permute.xlu0 %28  ;;  %v44_v10 = vpop.permute.xlu1 %43 }
  0x78   :  { %v32_v12 = vmul.f32 %v116_v8, %v29_v7 }
  0x7f   :  { %v52_v17 = vpop.permute.xlu1 %51 }
  0x80   :  { %v35_v11 = vpop.permute.xlu0 %34 }
  0x81   :  { %v38_v13 = vmul.f32 %v117_v9, %v35_v11 }
  0x83   :  { %v39_v14 = vadd.f32 %v38_v13, %v32_v12 }
  0x85   :  { %v46_v15 = vadd.f32 %v44_v10, %v39_v14 }
  0x87   :  { %v47_v16 = vmax.f32 %v46_v15, 0.0 }
  0x89   :  { %v54_v18 = vmul.f32 %v52_v17, %v47_v16 }
  0x8b   :  { %v56_v19 = vsel %vm55_vm0, %v54_v18, 0.0 }
  0x8c   :  { %v57_v20 = vrot.slane %v56_v19, 4 }
  0x8e   :  { %v58_v21 = vadd.f32 %v57_v20, %v56_v19 }
  0x90   :  { %v59_v22 = vrot.slane %v58_v21, 2 }
  0x92   :  { %v60_v24 = vadd.f32 %v59_v22, %v58_v21 }
  0x94   :  { %v61_v25 = vrot.slane %v60_v24, 1 }
  0x96   :  { %v62_v27 = vadd.f32 %v61_v25, %v60_v24 }
  0x98   :  { %v70_v28 = vadd.f32 %v69_v26, %v62_v27 }
  0x9a   :  { %v107_v29 = vmul.f32 -1.442695, %v70_v28 }
  0x9c   :  { %118 = vpow2.f32 %v107_v29 }
  0xa2   :  { %v119_v30 = vpop.eup %118 }
  0xa3   :  { %v74_v31 = vadd.f32 1.0, %v119_v30 }
  0xa5   :  { %120 = vrcp.f32 %v74_v31  ;;  %v86_v35 = vand.u32 2147483648, %v74_v31  ;;  %v84_v37 = vand.u32 2147483647, %v74_v31  ;;  %vm80_vm2 = vweird.f32 %v74_v31 }
  0xa7   :  { %v87_v39 = vor.u32 1.1754944e-38, %v86_v35  ;;  %vm85_vm4 = vcmp.eq.f32.partialorder %v84_v37, 8.507059e+37 }
  0xab   :  { %v121_v32 = vpop.eup %120 }
  0xac   :  { %v76_v33 = vmul.f32 %v121_v32, %v74_v31  ;;  %vm81_vm1 = vweird.f32 %v121_v32 }
  0xad   :  { %vm82_vm3 = vmor %vm80_vm2, %vm81_vm1 }
  0xae   :  { %v77_v34 = vsub.f32 1.0, %v76_v33 }
  0xb0   :  { %v78_v36 = vmul.f32 %v121_v32, %v77_v34 }
  0xb2   :  { %v79_v38 = vadd.f32 %v121_v32, %v78_v36 }
  0xb4   :  { %v83_v40 = vsel %vm82_vm3, %v121_v32, %v79_v38 }
  0xb5   :  { %v88_v41 = vsel %vm85_vm4, %v87_v39, %v83_v40 }
  0xb6   :  { %90 = vst [vmem:[#allocation3] sm:$0x1] %v88_v41 }
  0xb7   :  { %101 = dma.vmem_to_hbm [thread:$0]  %s97_s3, 16, %s99_s29, [#allocation4]  }
  0xb8   :  { %146 = dma.done.wait [#allocation4], 16  }
  0xb9   :  { %147 = vsyncadd [#allocation4], 4294967280 }
  0xba   :  { %106 = vsyncpa [#allocation4], 1 }

</bundles_post_ra>
